<compile_context>
chip_gen: v7x
topology: tpu7x:2x2x1
jax: 0.10.0
libtpu: 0.0.40
codegen_flags: <defaults>
</compile_context>

<pallas_src>
import jax
import jax.numpy as jnp
from jax.experimental import pallas as pl
from jax.experimental.pallas import tpu as pltpu

_LANES = 128


def _loss_kernel(e_ref, w_ref, b_ref, tgt_ref, out_ref, pad_ref):
    # e_ref  : (Bt, L)    f32 VMEM  per-instance exponent
    # w_ref  : (Bt, L+1)  f32 VMEM  per-instance weights
    # b_ref  : (Bt, L+1)  f32 VMEM  per-instance biases
    # tgt_ref: (1,)       f32 SMEM  target_loss (shared across batch)
    # out_ref: (Bt, 1)    f32 VMEM
    # pad_ref: (Bt, 128)  f32 VMEM scratch (lane-padded exponent)
    Bt, L = e_ref.shape
    W = L + 1

    # Lane-pad the exponent to a native 128-wide row (zeros beyond L) so the
    # XLU roll below always operates on a full-width vreg operand.
    pad_ref[...] = jnp.zeros_like(pad_ref)
    pad_ref[:, 0:L] = e_ref[...]
    e128 = pad_ref[...]                                     # (Bt, 128)

    lane128 = jax.lax.broadcasted_iota(jnp.int32, (Bt, _LANES), 1)

    # Hillis-Steele prefix sum along lanes: c[:, l] = sum_{k<=l} e[k].
    # Run far enough (shift < L+1) that lane L (padded value 0) also holds the
    # full sum of all L exponents.  Wrapped-around lanes are masked each step.
    c = e128
    shift = 1
    while shift < W:
        rolled = pltpu.roll(c, shift=shift, axis=1)         # rolled[l] = c[l - shift]
        c = c + jnp.where(lane128 >= shift, rolled, 0.0)
        shift *= 2

    # Narrow to the L+1 lanes actually used (lane L carries the totals).
    e_w = e128[:, 0:W]                                      # lane L == 0
    c_w = c[:, 0:W]                                         # lane L == sum(e)
    lane_w = jax.lax.broadcasted_iota(jnp.int32, (Bt, W), 1)

    w = w_ref[...]                                          # (Bt, W)
    b = b_ref[...]                                          # (Bt, W)

    # Per-lane contributions, all folded into one row -> one XLU reduction:
    #   l <  L : weights[l]*exp(-e[l])   + biases[l]*exp(-cumsum[l])
    #   l == L : weights[L]*exp(sum(e))  + biases[L]*exp(0)
    arg_w = jnp.where(lane_w < L, -e_w, c_w)
    arg_b = jnp.where(lane_w < L, -c_w, 0.0)
    loss = jnp.sum(w * jnp.exp(arg_w) + b * jnp.exp(arg_b), axis=1, keepdims=True)

    tgt = tgt_ref[0]
    out_ref[...] = jnp.abs(loss - tgt) + tgt


def _pick_batch_tile(B: int) -> int:
    """Full batch if small/odd; otherwise the largest dividing multiple of 8 (<=1024)."""
    if B <= 8 or B % 8 != 0:
        return B
    bt = 8
    while bt * 2 <= min(B, 1024) and B % (bt * 2) == 0:
        bt *= 2
    return bt


def loss_over_alpha_batched(exponent, weights, biases, target_loss=0.0):
    """exponent: (B, L); weights, biases: (B, L+1).  Returns (B,) f32 losses."""
    f32 = jnp.float32
    exponent = jnp.asarray(exponent, f32)
    weights = jnp.asarray(weights, f32)
    biases = jnp.asarray(biases, f32)
    B, L = exponent.shape
    assert weights.shape == (B, L + 1) and biases.shape == (B, L + 1)

    Bt = _pick_batch_tile(B)
    grid = (B // Bt,)
    tgt = jnp.reshape(jnp.asarray(target_loss, f32), (1,))

    out = pl.pallas_call(
        _loss_kernel,
        out_shape=jax.ShapeDtypeStruct((B, 1), f32),
        grid=grid,
        in_specs=[
            pl.BlockSpec((Bt, L), lambda i: (i, 0)),
            pl.BlockSpec((Bt, L + 1), lambda i: (i, 0)),
            pl.BlockSpec((Bt, L + 1), lambda i: (i, 0)),
            pl.BlockSpec(memory_space=pltpu.MemorySpace.SMEM),
        ],
        out_specs=pl.BlockSpec((Bt, 1), lambda i: (i, 0)),
        scratch_shapes=[pltpu.VMEM((Bt, _LANES), f32)],
        compiler_params=pltpu.CompilerParams(dimension_semantics=("parallel",)),
    )(exponent, weights, biases, tgt)
    return out[:, 0]


def loss_over_alpha(exponent, weights, biases, target_loss=0.0):
    """Single instance (matches the PyTorch forward): exponent (L,), weights/biases (L+1,)."""
    out = loss_over_alpha_batched(
        exponent[None, :], weights[None, :], biases[None, :], target_loss
    )
    return out[0]


def loss_over_alpha_ref(exponent, weights, biases, target_loss=0.0):
    """Pure-JAX reference mirroring the PyTorch forward loop (works batched or not)."""
    L = exponent.shape[-1]
    alpha2 = jnp.exp(exponent.astype(jnp.float32))
    loss = 0.0
    prod_scale = 1.0
    for l in range(L):
        loss = loss + weights[..., l] / alpha2[..., l]
        prod_scale = prod_scale * alpha2[..., l]
        loss = loss + biases[..., l] / prod_scale
    loss = loss + weights[..., L] * prod_scale
    loss = loss + biases[..., L]
    return jnp.abs(loss - target_loss) + target_loss


if __name__ == "__main__":
    key = jax.random.PRNGKey(0)
    k_exp, k_w, k_b = jax.random.split(key, 3)

    L = 4            # num_of_layer = 5 -> L = 4
    B = 8            # batch of loss instances (e.g. an optimizer sweep over alpha)
    exponent_b = 0.3 * jax.random.normal(k_exp, (B, L), dtype=jnp.float32)
    weights_b = jnp.abs(jax.random.normal(k_w, (B, L + 1), dtype=jnp.float32)) + 0.1
    biases_b = jnp.abs(jax.random.normal(k_b, (B, L + 1), dtype=jnp.float32)) + 0.1
    target_loss = 0.0

    # Batched path (grid over batch, parallel across TensorCores on v7x).
    out_b = jax.block_until_ready(
        loss_over_alpha_batched(exponent_b, weights_b, biases_b, target_loss))
    ref_b = loss_over_alpha_ref(exponent_b, weights_b, biases_b, target_loss)
    assert jnp.allclose(out_b, ref_b, rtol=1e-5, atol=1e-5), (out_b, ref_b)

    # Single-instance path, exactly the PyTorch module's forward().
    out_1 = jax.block_until_ready(
        loss_over_alpha(exponent_b[0], weights_b[0], biases_b[0], target_loss))
    ref_1 = loss_over_alpha_ref(exponent_b[0], weights_b[0], biases_b[0], target_loss)
    assert jnp.allclose(out_1, ref_1, rtol=1e-5, atol=1e-5), (out_1, ref_1)

    print("KERNEL_OK")
</pallas_src>

<mosaic_0001>
module attributes {stable_mosaic.version = 11 : i64} {
  func.func @_loss_kernel(%arg0: i32, %arg1: memref<8x4xf32, #tpu.memory_space<vmem>>, %arg2: memref<8x5xf32, #tpu.memory_space<vmem>>, %arg3: memref<8x5xf32, #tpu.memory_space<vmem>>, %arg4: memref<1xf32, #tpu.memory_space<smem>>, %arg5: memref<8x1xf32, #tpu.memory_space<vmem>>, %arg6: memref<8x128xf32, #tpu.memory_space<vmem>>) attributes {dimension_semantics = [#tpu.dimension_semantics<parallel>], iteration_bounds = array<i64: 1>, scalar_prefetch = 0 : i64, scratch_operands = 1 : i64, tpu.core_type = #tpu.core_type<tc>, window_params = [{transform_indices = @transform_0, window_bounds = array<i64: 8, 4>}, {transform_indices = @transform_1, window_bounds = array<i64: 8, 5>}, {transform_indices = @transform_2, window_bounds = array<i64: 8, 5>}, {transform_indices = @transform_3, window_bounds = array<i64: 1>}, {transform_indices = @transform_4, window_bounds = array<i64: 8, 1>}]} {
    %cst = arith.constant 0.000000e+00 : f32
    %0 = vector.broadcast %cst : f32 to vector<8x128xf32>
    %c0 = arith.constant 0 : index
    %c0_0 = arith.constant 0 : index
    %1 = vector.load %arg6[%c0, %c0_0] : memref<8x128xf32, #tpu.memory_space<vmem>>, vector<8x128xf32>
    tpu.vector_store %arg6[%c0, %c0_0], %0 {strides = array<i32>} : memref<8x128xf32, #tpu.memory_space<vmem>>, vector<8x128xf32>,
    %c0_1 = arith.constant 0 : index
    %c0_2 = arith.constant 0 : index
    %2 = vector.load %arg1[%c0_1, %c0_2] : memref<8x4xf32, #tpu.memory_space<vmem>>, vector<8x4xf32>
    %c0_3 = arith.constant 0 : index
    %c0_4 = arith.constant 0 : index
    %3 = vector.load %arg6[%c0_3, %c0_4] : memref<8x128xf32, #tpu.memory_space<vmem>>, vector<8x4xf32>
    tpu.vector_store %arg6[%c0_3, %c0_4], %2 {strides = array<i32>} : memref<8x128xf32, #tpu.memory_space<vmem>>, vector<8x4xf32>,
    %c0_5 = arith.constant 0 : index
    %c0_6 = arith.constant 0 : index
    %4 = vector.load %arg6[%c0_5, %c0_6] : memref<8x128xf32, #tpu.memory_space<vmem>>, vector<8x128xf32>
    %5 = tpu.iota {dimensions = array<i32: 1>} : vector<8x128xi32>
    %c1_i32 = arith.constant 1 : i32
    %6 = tpu.dynamic_rotate %4 by %c1_i32 dim 1 : vector<8x128xf32>, i32 -> vector<8x128xf32>
    %c1_i32_7 = arith.constant 1 : i32
    %7 = vector.broadcast %c1_i32_7 : i32 to vector<8x128xi32>
    %8 = arith.cmpi sge, %5, %7 : vector<8x128xi32>
    %cst_8 = arith.constant 0.000000e+00 : f32
    %9 = vector.broadcast %cst_8 : f32 to vector<8x128xf32>
    %10 = arith.select %8, %6, %9 : vector<8x128xi1>, vector<8x128xf32>
    %11 = arith.addf %4, %10 : vector<8x128xf32>
    %c2_i32 = arith.constant 2 : i32
    %12 = tpu.dynamic_rotate %11 by %c2_i32 dim 1 : vector<8x128xf32>, i32 -> vector<8x128xf32>
    %c2_i32_9 = arith.constant 2 : i32
    %13 = vector.broadcast %c2_i32_9 : i32 to vector<8x128xi32>
    %14 = arith.cmpi sge, %5, %13 : vector<8x128xi32>
    %cst_10 = arith.constant 0.000000e+00 : f32
    %15 = vector.broadcast %cst_10 : f32 to vector<8x128xf32>
    %16 = arith.select %14, %12, %15 : vector<8x128xi1>, vector<8x128xf32>
    %17 = arith.addf %11, %16 : vector<8x128xf32>
    %c4_i32 = arith.constant 4 : i32
    %18 = tpu.dynamic_rotate %17 by %c4_i32 dim 1 : vector<8x128xf32>, i32 -> vector<8x128xf32>
    %c4_i32_11 = arith.constant 4 : i32
    %19 = vector.broadcast %c4_i32_11 : i32 to vector<8x128xi32>
    %20 = arith.cmpi sge, %5, %19 : vector<8x128xi32>
    %cst_12 = arith.constant 0.000000e+00 : f32
    %21 = vector.broadcast %cst_12 : f32 to vector<8x128xf32>
    %22 = arith.select %20, %18, %21 : vector<8x128xi1>, vector<8x128xf32>
    %23 = arith.addf %17, %22 : vector<8x128xf32>
    %24 = vector.extract_strided_slice %4 {offsets = [0, 0], sizes = [8, 5], strides = [1, 1]} : vector<8x128xf32> to vector<8x5xf32>
    %25 = vector.extract_strided_slice %23 {offsets = [0, 0], sizes = [8, 5], strides = [1, 1]} : vector<8x128xf32> to vector<8x5xf32>
    %26 = tpu.iota {dimensions = array<i32: 1>} : vector<8x5xi32>
    %c0_13 = arith.constant 0 : index
    %c0_14 = arith.constant 0 : index
    %27 = vector.load %arg2[%c0_13, %c0_14] : memref<8x5xf32, #tpu.memory_space<vmem>>, vector<8x5xf32>
    %c0_15 = arith.constant 0 : index
    %c0_16 = arith.constant 0 : index
    %28 = vector.load %arg3[%c0_15, %c0_16] : memref<8x5xf32, #tpu.memory_space<vmem>>, vector<8x5xf32>
    %c4_i32_17 = arith.constant 4 : i32
    %29 = vector.broadcast %c4_i32_17 : i32 to vector<8x5xi32>
    %30 = arith.cmpi slt, %26, %29 : vector<8x5xi32>
    %cst_18 = arith.constant 0.000000e+00 : f32
    %31 = vector.broadcast %cst_18 : f32 to vector<8x5xf32>
    %32 = arith.subf %31, %24 : vector<8x5xf32>
    %33 = arith.select %30, %32, %25 : vector<8x5xi1>, vector<8x5xf32>
    %c4_i32_19 = arith.constant 4 : i32
    %34 = vector.broadcast %c4_i32_19 : i32 to vector<8x5xi32>
    %35 = arith.cmpi slt, %26, %34 : vector<8x5xi32>
    %cst_20 = arith.constant 0.000000e+00 : f32
    %36 = vector.broadcast %cst_20 : f32 to vector<8x5xf32>
    %37 = arith.subf %36, %25 : vector<8x5xf32>
    %cst_21 = arith.constant 0.000000e+00 : f32
    %38 = vector.broadcast %cst_21 : f32 to vector<8x5xf32>
    %39 = arith.select %35, %37, %38 : vector<8x5xi1>, vector<8x5xf32>
    %40 = math.exp %33 : vector<8x5xf32>
    %41 = arith.mulf %27, %40 : vector<8x5xf32>
    %42 = math.exp %39 : vector<8x5xf32>
    %43 = arith.mulf %28, %42 : vector<8x5xf32>
    %44 = arith.addf %41, %43 : vector<8x5xf32>
    %cst_22 = arith.constant dense<0.000000e+00> : vector<8xf32>
    %45 = vector.multi_reduction <add>, %44, %cst_22 [1] : vector<8x5xf32> to vector<8xf32>
    %46 = vector.shape_cast %45 : vector<8xf32> to vector<8x1xf32>
    %c0_23 = arith.constant 0 : index
    %47 = memref.load %arg4[%c0_23] : memref<1xf32, #tpu.memory_space<smem>>
    %48 = vector.broadcast %47 : f32 to vector<8x1xf32>
    %49 = arith.subf %46, %48 : vector<8x1xf32>
    %50 = math.absf %49 : vector<8x1xf32>
    %51 = vector.broadcast %47 : f32 to vector<8x1xf32>
    %52 = arith.addf %50, %51 : vector<8x1xf32>
    %c0_24 = arith.constant 0 : index
    %c0_25 = arith.constant 0 : index
    %53 = vector.load %arg5[%c0_24, %c0_25] : memref<8x1xf32, #tpu.memory_space<vmem>>, vector<8x1xf32>
    tpu.vector_store %arg5[%c0_24, %c0_25], %52 {strides = array<i32>} : memref<8x1xf32, #tpu.memory_space<vmem>>, vector<8x1xf32>,
    return
  }
  func.func @transform_0(%arg0: i32) -> (i32, i32) {
    %c0_i32 = arith.constant 0 : i32
    %c0_i32_0 = arith.constant 0 : i32
    return %arg0, %c0_i32 : i32, i32
  }
  func.func @transform_1(%arg0: i32) -> (i32, i32) {
    %c0_i32 = arith.constant 0 : i32
    %c0_i32_0 = arith.constant 0 : i32
    return %arg0, %c0_i32 : i32, i32
  }
  func.func @transform_2(%arg0: i32) -> (i32, i32) {
    %c0_i32 = arith.constant 0 : i32
    %c0_i32_0 = arith.constant 0 : i32
    return %arg0, %c0_i32 : i32, i32
  }
  func.func @transform_3(%arg0: i32) -> i32 {
    %c0_i32 = arith.constant 0 : i32
    %c0_i32_0 = arith.constant 0 : i32
    return %c0_i32 : i32
  }
  func.func @transform_4(%arg0: i32) -> (i32, i32) {
    %c0_i32 = arith.constant 0 : i32
    %c0_i32_0 = arith.constant 0 : i32
    return %arg0, %c0_i32 : i32, i32
  }
}

</mosaic_0001>

<bundles_post_ra>
// kernel: tpu_custom_call.1
= control target key start
LH: loop header
LB: loop body
LE: loop exit
PB: predicated region body
PF: predicated region fallthrough
CT: control target
= control target key end

     0   :  { %vm20_vm0 = vcmask 31744   ;;  %v77_v0 = vmov 0.0   ;;  %s78_s17 = smov 1   ;;  %v23_v3 = vlaneseq  ;;  %s79_s18 = smov 2   ;;  %vm54_vm5 = vcmask 39936   ;;  %s121_s0 = inlined_call_operand.vmem [shape: f32[8,4], index: 0, kind: input, shape index: {}]   ;;  %s122_s1 = inlined_call_operand.vmem [shape: f32[8,5], index: 1, kind: input, shape index: {}]   ;;  %s123_s2 = inlined_call_operand.vmem [shape: f32[8,5], index: 2, kind: input, shape index: {}]   ;;  %s124_s3 = inlined_call_operand.<no memory space> [shape: f32[1], index: 3, kind: input, shape index: {}]   ;;  %s125_s4 = inlined_call_operand.vmem [shape: f32[8,1], index: 4, kind: output, shape index: {}]  }
   0x1   :  { %18 = vst [vmem:[#allocation2] sm:$0xff] %v77_v0  ;;  %v19_v1 = vld [vmem:[%s121_s0] sm:$0xff]  ;;  %s80_s19 = smov 4   ;;  %v59_v28 = vstv %s124_s3  ;;  %vm63_vm6 = vcmask 7168  }
   0x2   :  { %21 = vst.msk [vmem:[#allocation2] sm:$0xff] %vm20_vm0, %v19_v1  ;;  %v24_v4 = vand.u32 127, %v23_v3  ;;  %v40_v21 = vld [vmem:[%s122_s1] sm:$0xff] }
   0x3   :  { %v41_v22 = vld [vmem:[%s123_s2] sm:$0xff] }
   0x4   :  { %vm27_vm1 = vcmp.ge.s32.totalorder %v24_v4, 1  ;;  %vm32_vm2 = vcmp.ge.s32.totalorder %v24_v4, 2  ;;  %vm37_vm3 = vcmp.ge.s32.totalorder %v24_v4, 4  ;;  %vm42_vm4 = vcmp.lt.s32.totalorder %v24_v4, 4 }
   0x9   :  { %v22_v2 = vld [vmem:[#allocation2] sm:$0xff] }
   0xa   :  { %25 = vrot.lane.b32.xlu0 %v22_v2, %s78_s17  ;;  %v43_v11 = vsub.f32 0.0, %v22_v2 }
  0x7c   :  { %v26_v5 = vpop.permute.xlu0 %25 }
  0x7d   :  { %v28_v6 = vsel %vm27_vm1, %v26_v5, 0.0 }
  0x7e   :  { %v29_v7 = vadd.f32 %v28_v6, %v22_v2 }
  0x80   :  { %30 = vrot.lane.b32.xlu0 %v29_v7, %s79_s18 }
  0xf2   :  { %v31_v8 = vpop.permute.xlu0 %30 }
  0xf3   :  { %v33_v9 = vsel %vm32_vm2, %v31_v8, 0.0 }
  0xf4   :  { %v34_v10 = vadd.f32 %v33_v9, %v29_v7 }
  0xf6   :  { %35 = vrot.lane.b32.xlu1 %v34_v10, %s80_s19 }
 0x168   :  { %v36_v12 = vpop.permute.xlu1 %35 }
 0x169   :  { %v38_v13 = vsel %vm37_vm3, %v36_v12, 0.0 }
 0x16a   :  { %v39_v14 = vadd.f32 %v38_v13, %v34_v10 }
 0x16c   :  { %v44_v15 = vsel %vm42_vm4, %v43_v11, %v39_v14  ;;  %v45_v16 = vsub.f32 0.0, %v39_v14 }
 0x16d   :  { %v47_v17 = vmul.f32 1.442695, %v44_v15 }
 0x16e   :  { %v46_v18 = vsel %vm42_vm4, %v45_v16, 0.0 }
 0x16f   :  { %73 = vpow2.f32 %v47_v17  ;;  %v50_v19 = vmul.f32 1.442695, %v46_v18 }
 0x171   :  { %75 = vpow2.f32 %v50_v19 }
 0x179   :  { %v74_v20 = vpop.eup %73 }
 0x17a   :  { %v49_v24 = vmul.f32 %v74_v20, %v40_v21 }
 0x17b   :  { %v76_v23 = vpop.eup %75 }
 0x17c   :  { %v52_v25 = vmul.f32 %v76_v23, %v41_v22 }
 0x17e   :  { %v53_v26 = vadd.f32 %v52_v25, %v49_v24 }
 0x180   :  { %v55_v27 = vsel %vm54_vm5, %v53_v26, 0.0 }
 0x181   :  { %56 = vadd.xlane.f32.xlu1 %v55_v27 }
 0x20e   :  { %v57_v29 = vpop.xlane.xlu1 %56 }
 0x20f   :  { %v60_v30 = vsub.f32 %v57_v29, %v59_v28 }
 0x211   :  { %v61_v31 = vand.u32 2147483647, %v60_v30 }
 0x213   :  { %v62_v32 = vadd.f32 %v61_v31, %v59_v28 }
 0x215   :  { %64 = vst.msk [vmem:[%s125_s4] sm:$0xff] %vm63_vm6, %v62_v32 }

</bundles_post_ra>
